<compile_context>
chip_gen: v7x
topology: tpu7x:2x2x1
jax: 0.10.0
libtpu: 0.0.40
codegen_flags: <defaults>
</compile_context>

<pallas_src>
import jax
import jax.numpy as jnp
from jax import lax
from jax.experimental import pallas as pl
from jax.experimental.pallas import tpu as pltpu  # noqa: F401  (TPU backend)

RNN_MASK_HIDDEN_DIM = 64     # space_cfg.rnn_mask_hidden_dim (small, synthetic)
Z_MASK_DIM = 32              # space_cfg.z_mask_dim
SCALE_EPS = 1e-4


# ----------------------------- Pallas kernel -------------------------------

def _predict_mask_kernel(h_ref, w_ref, b_ref, loc_ref, scale_ref):
    """loc, scale = split(h @ W.T + b); scale = softplus(scale) + 1e-4."""
    # Single MXU pass: contract h's feature dim with W's `in_features` dim
    # (torch Linear weight layout is (out_features, in_features)).
    x = lax.dot_general(
        h_ref[...], w_ref[...],
        dimension_numbers=(((1,), (1,)), ((), ())),
        preferred_element_type=jnp.float32,
    ) + b_ref[...]                                    # (B, 2D) + (1, 2D)

    d = loc_ref.shape[1]
    loc_ref[...] = x[:, :d].astype(loc_ref.dtype)

    s = x[:, d:]
    # Numerically stable softplus: max(s, 0) + log1p(exp(-|s|))
    sp = jnp.maximum(s, 0.0) + jnp.log1p(jnp.exp(-jnp.abs(s)))
    scale_ref[...] = (sp + SCALE_EPS).astype(scale_ref.dtype)


def predict_mask(h, fc_w, fc_b2d):
    """h: (B, H); fc_w: (2D, H) torch layout; fc_b2d: (1, 2D)."""
    B, H = h.shape
    out2, H2 = fc_w.shape
    assert H == H2 and out2 % 2 == 0 and fc_b2d.shape == (1, out2)
    D = out2 // 2
    return pl.pallas_call(
        _predict_mask_kernel,
        out_shape=(
            jax.ShapeDtypeStruct((B, D), jnp.float32),   # z_mask_loc
            jax.ShapeDtypeStruct((B, D), jnp.float32),   # z_mask_scale
        ),
        grid=(1,),
        # Full-array blocks: last-two-dims == full dims is always legal on TPU,
        # everything (inputs + both outputs) is resident in VMEM for the call.
        in_specs=[
            pl.BlockSpec((B, H), lambda i: (0, 0)),
            pl.BlockSpec((out2, H), lambda i: (0, 0)),
            pl.BlockSpec((1, out2), lambda i: (0, 0)),
        ],
        out_specs=(
            pl.BlockSpec((B, D), lambda i: (0, 0)),
            pl.BlockSpec((B, D), lambda i: (0, 0)),
        ),
    )(h, fc_w, fc_b2d)


predict_mask_jit = jax.jit(predict_mask)


# --------------------------- parameter construction -------------------------

def make_params(key):
    k_w, k_b = jax.random.split(key)
    fc_w = 0.05 * jax.random.normal(
        k_w, (2 * Z_MASK_DIM, RNN_MASK_HIDDEN_DIM), jnp.float32)
    fc_b = 0.05 * jax.random.normal(k_b, (2 * Z_MASK_DIM,), jnp.float32)
    # Pre-shape the bias to (1, 2D) once at parameter-construction time so the
    # jitted forward contains exactly one op: the fused pallas_call.
    return {"fc_w": fc_w, "fc_b2d": fc_b[None, :]}


# ------------------------------ pure-JAX reference ---------------------------

def reference_predict_mask(h, params):
    x = h @ params["fc_w"].T + params["fc_b2d"][0]
    loc = x[:, :Z_MASK_DIM]
    scale = jax.nn.softplus(x[:, Z_MASK_DIM:]) + SCALE_EPS
    return loc, scale


# ----------------------------------- main ------------------------------------

if __name__ == "__main__":
    key = jax.random.PRNGKey(0)
    k_h, k_p = jax.random.split(key)

    B = 2
    h = jax.random.normal(k_h, (B, RNN_MASK_HIDDEN_DIM), jnp.float32)
    params = make_params(k_p)

    loc, scale = predict_mask_jit(h, params["fc_w"], params["fc_b2d"])
    loc = jax.block_until_ready(loc)
    scale = jax.block_until_ready(scale)
    assert loc.shape == (B, Z_MASK_DIM), loc.shape
    assert scale.shape == (B, Z_MASK_DIM), scale.shape

    ref_loc, ref_scale = reference_predict_mask(h, params)
    if not jnp.allclose(loc, ref_loc, atol=1e-5, rtol=1e-5):
        raise AssertionError("z_mask_loc does not match JAX reference")
    if not jnp.allclose(scale, ref_scale, atol=1e-5, rtol=1e-5):
        raise AssertionError("z_mask_scale does not match JAX reference")
    # scale must be strictly positive (softplus + eps)
    assert bool(jnp.all(scale > 0.0))

    print("KERNEL_OK")
</pallas_src>

<mosaic_0001>
module attributes {stable_mosaic.version = 11 : i64} {
  func.func @_predict_mask_kernel(%arg0: i32, %arg1: memref<2x64xf32, #tpu.memory_space<vmem>>, %arg2: memref<64x64xf32, #tpu.memory_space<vmem>>, %arg3: memref<1x64xf32, #tpu.memory_space<vmem>>, %arg4: memref<2x32xf32, #tpu.memory_space<vmem>>, %arg5: memref<2x32xf32, #tpu.memory_space<vmem>>) attributes {dimension_semantics = [#tpu.dimension_semantics<arbitrary>], iteration_bounds = array<i64: 1>, scalar_prefetch = 0 : i64, scratch_operands = 0 : i64, tpu.core_type = #tpu.core_type<tc>, window_params = [{pipeline_mode = #tpu.pipeline_mode<synchronous>, transform_indices = @transform_0, window_bounds = array<i64: 2, 64>}, {pipeline_mode = #tpu.pipeline_mode<synchronous>, transform_indices = @transform_1, window_bounds = array<i64: 64, 64>}, {pipeline_mode = #tpu.pipeline_mode<synchronous>, transform_indices = @transform_2, window_bounds = array<i64: 1, 64>}, {pipeline_mode = #tpu.pipeline_mode<synchronous>, transform_indices = @transform_3, window_bounds = array<i64: 2, 32>}, {pipeline_mode = #tpu.pipeline_mode<synchronous>, transform_indices = @transform_4, window_bounds = array<i64: 2, 32>}]} {
    %c0 = arith.constant 0 : index
    %c0_0 = arith.constant 0 : index
    %0 = vector.load %arg1[%c0, %c0_0] : memref<2x64xf32, #tpu.memory_space<vmem>>, vector<2x64xf32>
    %c0_1 = arith.constant 0 : index
    %c0_2 = arith.constant 0 : index
    %1 = vector.load %arg2[%c0_1, %c0_2] : memref<64x64xf32, #tpu.memory_space<vmem>>, vector<64x64xf32>
    %cst = arith.constant dense<0.000000e+00> : vector<2x64xf32>
    %2 = tpu.matmul %0, %1, %cst {dimension_numbers = #tpu.dot_dimension_numbers<[1], [1], [0], [0], [0, 0, 1, 0], [], []>} : vector<2x64xf32>, vector<64x64xf32>, vector<2x64xf32> -> vector<2x64xf32>
    %c0_3 = arith.constant 0 : index
    %c0_4 = arith.constant 0 : index
    %3 = vector.load %arg3[%c0_3, %c0_4] : memref<1x64xf32, #tpu.memory_space<vmem>>, vector<1x64xf32>
    %4 = vector.broadcast %3 : vector<1x64xf32> to vector<2x64xf32>
    %5 = arith.addf %2, %4 : vector<2x64xf32>
    %6 = vector.extract_strided_slice %5 {offsets = [0, 0], sizes = [2, 32], strides = [1, 1]} : vector<2x64xf32> to vector<2x32xf32>
    %c0_5 = arith.constant 0 : index
    %c0_6 = arith.constant 0 : index
    %7 = vector.load %arg4[%c0_5, %c0_6] : memref<2x32xf32, #tpu.memory_space<vmem>>, vector<2x32xf32>
    tpu.vector_store %arg4[%c0_5, %c0_6], %6 {strides = array<i32>} : memref<2x32xf32, #tpu.memory_space<vmem>>, vector<2x32xf32>,
    %8 = vector.extract_strided_slice %5 {offsets = [0, 32], sizes = [2, 32], strides = [1, 1]} : vector<2x64xf32> to vector<2x32xf32>
    %cst_7 = arith.constant 0.000000e+00 : f32
    %9 = vector.broadcast %cst_7 : f32 to vector<2x32xf32>
    %10 = arith.maximumf %8, %9 : vector<2x32xf32>
    %11 = math.absf %8 : vector<2x32xf32>
    %cst_8 = arith.constant 0.000000e+00 : f32
    %12 = vector.broadcast %cst_8 : f32 to vector<2x32xf32>
    %13 = arith.subf %12, %11 : vector<2x32xf32>
    %14 = math.exp %13 : vector<2x32xf32>
    %15 = math.log1p %14 : vector<2x32xf32>
    %16 = arith.addf %10, %15 : vector<2x32xf32>
    %cst_9 = arith.constant 9.99999974E-5 : f32
    %17 = vector.broadcast %cst_9 : f32 to vector<2x32xf32>
    %18 = arith.addf %16, %17 : vector<2x32xf32>
    %c0_10 = arith.constant 0 : index
    %c0_11 = arith.constant 0 : index
    %19 = vector.load %arg5[%c0_10, %c0_11] : memref<2x32xf32, #tpu.memory_space<vmem>>, vector<2x32xf32>
    tpu.vector_store %arg5[%c0_10, %c0_11], %18 {strides = array<i32>} : memref<2x32xf32, #tpu.memory_space<vmem>>, vector<2x32xf32>,
    return
  }
  func.func @transform_0(%arg0: i32) -> (i32, i32) {
    %c0_i32 = arith.constant 0 : i32
    %c0_i32_0 = arith.constant 0 : i32
    %c0_i32_1 = arith.constant 0 : i32
    return %c0_i32, %c0_i32_0 : i32, i32
  }
  func.func @transform_1(%arg0: i32) -> (i32, i32) {
    %c0_i32 = arith.constant 0 : i32
    %c0_i32_0 = arith.constant 0 : i32
    %c0_i32_1 = arith.constant 0 : i32
    return %c0_i32, %c0_i32_0 : i32, i32
  }
  func.func @transform_2(%arg0: i32) -> (i32, i32) {
    %c0_i32 = arith.constant 0 : i32
    %c0_i32_0 = arith.constant 0 : i32
    %c0_i32_1 = arith.constant 0 : i32
    return %c0_i32, %c0_i32_0 : i32, i32
  }
  func.func @transform_3(%arg0: i32) -> (i32, i32) {
    %c0_i32 = arith.constant 0 : i32
    %c0_i32_0 = arith.constant 0 : i32
    %c0_i32_1 = arith.constant 0 : i32
    return %c0_i32, %c0_i32_0 : i32, i32
  }
  func.func @transform_4(%arg0: i32) -> (i32, i32) {
    %c0_i32 = arith.constant 0 : i32
    %c0_i32_0 = arith.constant 0 : i32
    %c0_i32_1 = arith.constant 0 : i32
    return %c0_i32, %c0_i32_0 : i32, i32
  }
}

</mosaic_0001>

<bundles_post_ra>
// kernel: predict_mask.1
= control target key start
LH: loop header
LB: loop body
LE: loop exit
PB: predicated region body
PF: predicated region fallthrough
CT: control target
= control target key end

     0   :  { %10 = vsyncpa [#allocation3], 0  ;;  %s485_s0 = inlined_call_operand.hbm [shape: f32[2,64], index: 0, kind: input, shape index: {}]   ;;  %s486_s1 = inlined_call_operand.hbm [shape: f32[64,64], index: 1, kind: input, shape index: {}]   ;;  %s487_s2 = inlined_call_operand.vmem [shape: f32[1,64], index: 2, kind: input, shape index: {}]   ;;  %s488_s3 = inlined_call_operand.hbm [shape: f32[2,32], index: 3, kind: output, shape index: {0}]   ;;  %s489_s4 = inlined_call_operand.hbm [shape: f32[2,32], index: 4, kind: output, shape index: {1}]  }
   0x1   :  { %11 = vsyncpa [#allocation6], 0 }
   0x2   :  { %12 = vsyncpa [#allocation4], 0 }
   0x3   :  { %13 = vsyncpa [#allocation9], 0  ;;  %s375_s15 = smov [#allocation2]   ;;  %s376_s17 = smov [#allocation5]  }
   0x4   :  { %s20_s16 = sshll.u32 %s375_s15, 4  ;;  %s29_s18 = sshll.u32 %s376_s17, 4  ;;  %s21_s16 = int_to_ptr.vmem [resolvable:$true] %s20_s16  ;;  %s410_s18 = int_to_ptr.vmem [resolvable:$true] %s29_s18 }
   0x5   :  { %s279_s21 = scalar_lea.hbm %s485_s0, 32 }
   0x6   :  { %p280_p0 = scmp.ne.s32.totalorder %s485_s0, %s279_s21  ;;  %p283_p1 = scmp.lt.u32.totalorder %s279_s21, %s485_s0 }
   0x8   :  { %p285_p2 = pnand %p283_p1, %p280_p0 }
   0xa   :  { %288 = shalt.err (!%p285_p2)
}
   0xb   :  { %s289_s26 = scalar_lea.vmem %s21_s16, 32  ;;  %p294_p4 = scmp.lt.s32.totalorder %s21_s16, %s21_s16 }
   0xc   :  { %p290_p3 = scmp.ne.s32.totalorder %s21_s16, %s289_s26  ;;  %p295_p5 = scmp.lt.s32.totalorder %s289_s26, %s289_s26 }
   0xe   :  { %p296_p6 = por %p295_p5, %p294_p4 }
  0x10   :  { %p297_p7 = pnand %p296_p6, %p290_p3 }
  0x12   :  { %300 = shalt.err (!%p297_p7)
}
  0x13   :  { %23 = dma.hbm_to_vmem [thread:$0]  %s485_s0, 32, %s21_s16, [#allocation3]  }
  0x14   :  { %s301_s5 = scalar_lea.hbm %s486_s1, 1024 }
  0x15   :  { %p302_p8 = scmp.ne.s32.totalorder %s486_s1, %s301_s5  ;;  %p305_p9 = scmp.lt.u32.totalorder %s301_s5, %s486_s1 }
  0x17   :  { %p307_p10 = pnand %p305_p9, %p302_p8 }
  0x19   :  { %310 = shalt.err (!%p307_p10)
}
  0x1a   :  { %s311_s10 = scalar_lea.vmem %s410_s18, 1024  ;;  %p316_p12 = scmp.lt.s32.totalorder %s410_s18, %s410_s18 }
  0x1b   :  { %p312_p11 = scmp.ne.s32.totalorder %s410_s18, %s311_s10  ;;  %p317_p13 = scmp.lt.s32.totalorder %s311_s10, %s311_s10 }
  0x1d   :  { %p318_p0 = por %p317_p13, %p316_p12 }
  0x1f   :  { %p319_p1 = pnand %p318_p0, %p312_p11 }
  0x21   :  { %322 = shalt.err (!%p319_p1)
}
  0x22   :  { %s377_s0 = smov 128   ;;  %s378_s11 = smov 8  }
  0x23   :  { %35 = dma.hbm_to_vmem [thread:$0]  %s486_s1, 1024, %s410_s18, [#allocation6], %s377_s0, %s377_s0, %s378_s11  }
  0x24   :  { %367 = dma.done.wait [#allocation3], 32  }
  0x25   :  { %368 = vsyncadd [#allocation3], 4294967264 }
  0x26   :  { %369 = dma.done.wait [#allocation6], 1024  }
  0x27   :  { %370 = vsyncadd [#allocation6], 4294966272  ;;  %v379_v0 = vmov 0.0|0.0   ;;  %vm380_vm0 = vmmov 0   ;;  %v381_v1 = vmov 0.0   ;;  %vm60_vm1 = vcmask 523264  }
  0x28   :  { %249 = vmatprep.subr.bf16.mxu0 %v379_v0  ;;  %246 = vmatprep.mubr.msk.f32.mxu0 %vm380_vm0, %v381_v1  ;;  %v45_v2 = vld [vmem:[#allocation5] sm:$0xff]  ;;  %v46_v3 = vld [vmem:[#allocation5 + $0x8] sm:$0xff]  ;;  %vm443_vm2 = vmpackc.low %vm60_vm1, %vm60_vm1  ;;  %vm158_vm3 = vcmask 254976   ;;  %s382_s15 = smov [#allocation7]  }
  0x29   :  { %v250_v5 = vpack.c.bf16 %v46_v3, %v45_v2  ;;  %v47_v6 = vld [vmem:[#allocation5 + $0x10] sm:$0xff]  ;;  %v48_v7 = vld [vmem:[#allocation5 + $0x18] sm:$0xff]  ;;  %v49_v9 = vld [vmem:[#allocation5 + $0x20] sm:$0xff]  ;;  %s187_s16 = sshll.u32 %s382_s15, 4  ;;  %s188_s16 = int_to_ptr.vmem [resolvable:$true] %s187_s16 }
  0x2a   :  { %v254_v8 = vpack.c.bf16 %v48_v7, %v47_v6  ;;  %v50_v10 = vld [vmem:[#allocation5 + $0x28] sm:$0xff]  ;;  %v51_v12 = vld [vmem:[#allocation5 + $0x30] sm:$0xff]  ;;  %v52_v13 = vld [vmem:[#allocation5 + $0x38] sm:$0xff]  ;;  %s323_s17 = scalar_lea.vmem %s188_s16, 32  ;;  %p328_p3 = scmp.lt.s32.totalorder %s188_s16, %s188_s16 }
  0x2b   :  { %252 = vmatpush3.bf16.xpose.msk.msra.mxu0 %vm443_vm2, %v250_v5  ;;  %v258_v11 = vpack.c.bf16 %v50_v10, %v49_v9  ;;  %v262_v14 = vpack.c.bf16 %v52_v13, %v51_v12  ;;  %v44_v15 = vld [vmem:[#allocation2] sm:$0x3]  ;;  %p324_p2 = scmp.ne.s32.totalorder %s188_s16, %s323_s17  ;;  %p329_p4 = scmp.lt.s32.totalorder %s323_s17, %s323_s17 }
  0x2c   :  { %253 = vmatprep.subr.bf16.mxu0 %v379_v0  ;;  %v211_v16 = vld [vmem:[%s487_s2] ss:$0 sm:$0xff] }
  0x2d   :  { %p330_p5 = por %p329_p4, %p328_p3 }
  0x2f   :  { %p331_p6 = pnand %p330_p5, %p324_p2 }
  0x33   :  { %256 = vmatpush3.bf16.xpose.msk.msra.mxu0 %vm443_vm2, %v254_v8 }
  0x34   :  { %257 = vmatprep.subr.bf16.mxu0 %v379_v0 }
  0x3b   :  { %260 = vmatpush3.bf16.xpose.msk.msra.mxu0 %vm443_vm2, %v258_v11 }
  0x3c   :  { %261 = vmatprep.subr.bf16.mxu0 %v379_v0 }
  0x43   :  { %264 = vmatpush3.bf16.xpose.msk.msra.mxu0 %vm443_vm2, %v262_v14 }
  0x4a   :  { %247 = vmatmul.mubr.msk.f32.vlgmr.msra.gmra.mrb[0].mxu0 %vm60_vm1, %v44_v15 }
 0x11d   :  { %v154_v17 = vpop.f32.mrb[0].mxu0 }
 0x11e   :  { %v155_v18 = vadd.f32 %v211_v16, %v154_v17  ;;  %v248_v19 = vpop.f32.mrb[1].mxu0 }
 0x120   :  { %v161_v20 = vand.u32 2147483647, %v155_v18  ;;  %159 = vst.msk [vmem:[#allocation7] sm:$0x3] %vm158_vm3, %v155_v18 }
 0x122   :  { %v162_v21 = vsub.f32 0.0, %v161_v20 }
 0x124   :  { %v163_v22 = vmul.f32 1.442695, %v162_v21 }
 0x126   :  { %275 = vpow2.f32 %v163_v22 }
 0x130   :  { %v276_v23 = vpop.eup %275 }
 0x131   :  { %v165_v24 = vadd.f32 1.0, %v276_v23  ;;  %v168_v25 = vmul.f32 -0.5, %v276_v23 }
 0x133   :  { %277 = vlog2.f32 %v165_v24 }
 0x134   :  { %334 = shalt.err (!%p331_p6)
}
 0x135   :  { %s335_s19 = scalar_lea.hbm %s488_s3, 32 }
 0x136   :  { %p336_p7 = scmp.ne.s32.totalorder %s488_s3, %s335_s19  ;;  %p339_p8 = scmp.lt.u32.totalorder %s335_s19, %s488_s3 }
 0x138   :  { %p341_p9 = pnand %p339_p8, %p336_p7 }
 0x13a   :  { %344 = shalt.err (!%p341_p9)
}
 0x13b   :  { %190 = dma.vmem_to_hbm [thread:$0]  %s188_s16, 32, %s488_s3, [#allocation4]   ;;  %v169_v26 = vadd.f32 1.0, %v168_v25  ;;  %v171_v27 = vand.u32 2147483647, %v276_v23  ;;  %v160_v31 = vmax.f32 %v155_v18, 0.0 }
 0x13c   :  { %s383_s26 = smov 96   ;;  %s384_s27 = smov [#allocation8]  }
 0x13d   :  { %v278_v28 = vpop.eup %277  ;;  %v170_v30 = vmul.f32 %v276_v23, %v169_v26  ;;  %vm172_vm4 = vcmp.lt.f32.partialorder %v171_v27, 0.0004427343  ;;  %s197_s28 = sshll.u32 %s384_s27, 4  ;;  %s198_s28 = int_to_ptr.vmem [resolvable:$true] %s197_s28 }
 0x13e   :  { %v167_v29 = vmul.f32 0.6931472, %v278_v28  ;;  %s345_s29 = scalar_lea.vmem %s198_s28, 32  ;;  %p350_p11 = scmp.lt.s32.totalorder %s198_s28, %s198_s28 }
 0x13f   :  { %p346_p10 = scmp.ne.s32.totalorder %s198_s28, %s345_s29  ;;  %p351_p12 = scmp.lt.s32.totalorder %s345_s29, %s345_s29 }
 0x140   :  { %v173_v32 = vsel %vm172_vm4, %v170_v30, %v167_v29 }
 0x141   :  { %v174_v33 = vadd.f32 %v173_v32, %v160_v31  ;;  %p352_p13 = por %p351_p12, %p350_p11 }
 0x143   :  { %v175_v34 = vadd.f32 0.0001, %v174_v33  ;;  %p353_p0 = pnand %p352_p13, %p346_p10 }
 0x145   :  { %177 = vrot.lane.b32.xlu0 %v175_v34, %s383_s26 }
 0x1b7   :  { %v178_v35 = vpop.permute.xlu0 %177 }
 0x1b8   :  { %180 = vst.msk [vmem:[#allocation8] sm:$0x3] %vm158_vm3, %v178_v35 }
 0x1b9   :  { %356 = shalt.err (!%p353_p0)
}
 0x1ba   :  { %s357_s5 = scalar_lea.hbm %s489_s4, 32 }
 0x1bb   :  { %p358_p1 = scmp.ne.s32.totalorder %s489_s4, %s357_s5  ;;  %p361_p2 = scmp.lt.u32.totalorder %s357_s5, %s489_s4 }
 0x1bd   :  { %p363_p3 = pnand %p361_p2, %p358_p1 }
 0x1bf   :  { %366 = shalt.err (!%p363_p3)
}
 0x1c0   :  { %200 = dma.vmem_to_hbm [thread:$0]  %s198_s28, 32, %s489_s4, [#allocation9]  }
 0x1c1   :  { %371 = dma.done.wait [#allocation4], 32  }
 0x1c2   :  { %372 = vsyncadd [#allocation4], 4294967264 }
 0x1c3   :  { %373 = dma.done.wait [#allocation9], 32  }
 0x1c4   :  { %374 = vsyncadd [#allocation9], 4294967264 }
 0x1c5   :  { %207 = vsyncpa [#allocation3], 1 }
 0x1c6   :  { %208 = vsyncpa [#allocation6], 1 }
 0x1c7   :  { %209 = vsyncpa [#allocation4], 1 }
 0x1c8   :  { %210 = vsyncpa [#allocation9], 1 }

</bundles_post_ra>
